<compile_context>
chip_gen: v7x
topology: tpu7x:2x2x1
jax: 0.10.0
libtpu: 0.0.40
codegen_flags: <defaults>
</compile_context>

<pallas_src>
import jax
import jax.numpy as jnp
import numpy as np
from jax import lax
from jax.experimental import pallas as pl
from jax.experimental.pallas import tpu as pltpu

LN_EPS = 1e-5
INV_SQRT2 = 0.7071067811865475


def _round_up(v, m):
    return ((v + m - 1) // m) * m


def _default_tile_rows():
    # 256 keeps MXU-shaped row tiles on v6e/v7x; v5e (4x128 MXU, 16 MiB scoped
    # VMEM default) prefers 128.
    try:
        kind = jax.devices()[0].device_kind.lower()
        if "v5 lite" in kind or "v5e" in kind or "v5lite" in kind:
            return 128
    except Exception:
        pass
    return 256


def _spec(shape, index_map, buffer_count=None):
    """BlockSpec helper: optionally request a non-default pipeline buffer count."""
    if buffer_count is not None and hasattr(pl, "Buffered"):
        try:
            return pl.BlockSpec(shape, index_map,
                                pipeline_mode=pl.Buffered(buffer_count))
        except TypeError:
            pass
    return pl.BlockSpec(shape, index_map)


def ffpp_kernel(x_ref, shift_ref, scale1_ref, gamma_ref, beta_ref,
                w1u_ref, b1u_ref, w1g_ref, b1g_ref, w2_ref, b2_ref,
                o_ref, xn_ref, acc_ref):
    h_idx = pl.program_id(2)

    # --- LayerNorm once per (batch, row-tile); cache xn across the H axis ------
    @pl.when(h_idx == 0)
    def _():
        x = x_ref[0].astype(jnp.float32)                        # (TM, D)
        mean = jnp.mean(x, axis=-1, keepdims=True)
        xc = x - mean
        var = jnp.mean(xc * xc, axis=-1, keepdims=True)         # E[(x-mean)^2]
        xn = xc * lax.rsqrt(var + LN_EPS)
        xn = xn * gamma_ref[...] + beta_ref[...]
        xn_ref[...] = xn.astype(xn_ref.dtype)
        acc_ref[...] = jnp.zeros_like(acc_ref)

    xn = xn_ref[...]                                            # (TM, D) matmul dtype

    # --- dense_1 (this H tile), split into value / gate halves -----------------
    u = jnp.dot(xn, w1u_ref[...], preferred_element_type=jnp.float32) + b1u_ref[...]
    g = jnp.dot(xn, w1g_ref[...], preferred_element_type=jnp.float32) + b1g_ref[...]

    # --- GEGLU: u * gelu(g) (exact erf gelu, PyTorch F.gelu default) -----------
    hv = u * (0.5 * g * (1.0 + lax.erf(g * INV_SQRT2)))         # (TM, TH)

    # --- conditioning: addcmul(shift, hv, scale + 1); "+1" folded in wrapper ---
    hv = shift_ref[0] + hv * scale1_ref[0]

    # dropout(p=0.0) is identity.
    # TODO(synk): a p>0 dropout path would need pltpu.prng_seed / prng_random_bits.

    # --- dense_2 partial product accumulated over H tiles ----------------------
    acc_ref[...] += jnp.dot(hv.astype(w2_ref.dtype), w2_ref[...],
                            preferred_element_type=jnp.float32)

    @pl.when(h_idx == pl.num_programs(2) - 1)
    def _():
        o_ref[0] = (acc_ref[...] + b2_ref[...]).astype(o_ref.dtype)


def feed_forward_pp(x, t, params, *, tile_rows=None, tile_h=2048,
                    matmul_dtype=jnp.bfloat16):
    """x: (B, N, D), t: (B, T_emb). params = (gamma, beta, w1, b1, wc, bc, w2, b2)."""
    B, N, D = x.shape
    gamma, beta, w1, b1, wc, bc, w2, b2 = params
    H = w1.shape[1] // 2

    # cond_layer hoisted out of the kernel (tiny (B, 2H) matmul, plain XLA).
    cond = (t @ wc + bc.reshape(1, -1)).astype(jnp.float32)     # (B, 2H)
    shift = cond[:, :H].reshape(B, 1, H)
    scale1 = (cond[:, H:] + 1.0).reshape(B, 1, H)               # fold the "+1" here

    # Split dense_1 into value/gate halves; optionally cast weights for the MXU.
    w1u, w1g = w1[:, :H], w1[:, H:]
    b1f = b1.reshape(1, 2 * H)
    b1u, b1g = b1f[:, :H], b1f[:, H:]
    gamma2, beta2, b2r = gamma.reshape(1, D), beta.reshape(1, D), b2.reshape(1, D)
    w2c = w2
    if matmul_dtype is not None:                                # bf16: v6e/v7x MXU-native
        w1u = w1u.astype(matmul_dtype)
        w1g = w1g.astype(matmul_dtype)
        w2c = w2.astype(matmul_dtype)
    mm_dtype = w1u.dtype
    # TODO(synk): optional fp8 weight path for v7x (MXU fp8) not implemented.

    # --- row tiling (no padding; last block's OOB rows are masked on write) ----
    if tile_rows is None:
        tile_rows = _default_tile_rows()
    TM = max(8, _round_up(min(int(tile_rows), _round_up(N, 8)), 8))
    if B * pl.cdiv(N, TM) < 2 and N > 8:       # keep >= 2 parallel steps (v7x megacore)
        TM = max(8, _round_up(pl.cdiv(N, 2), 8))
    NT = pl.cdiv(N, TM)

    # --- H tiling: reduction axis of dense_2, must divide H exactly ------------
    TH = min(int(tile_h), H)
    if TH < H:
        TH = max(128, (TH // 128) * 128)
        while TH > 128 and H % TH != 0:
            TH -= 128
        if H % TH != 0:
            TH = H                                              # fall back: no H tiling
    HT = H // TH

    # --- explicit VMEM budget (blocks x pipeline buffers + scratch + temps) ----
    xb, wb = x.dtype.itemsize, w1u.dtype.itemsize
    w_bufs = 1 if HT == 1 else 2
    vmem_need = (
        2 * TM * D * xb                                   # x tiles
        + 2 * 2 * TH * 4                                  # shift / (scale+1) tiles
        + 3 * D * 4                                       # gamma, beta, b2
        + w_bufs * (2 * (D * TH + TH) + TH * D) * wb      # w1u/b1u, w1g/b1g, w2
        + 2 * TM * D * xb                                 # output tiles
        + TM * D * (4 + wb)                               # acc + xn scratch
        + 3 * TM * TH * 4                                 # u / g / hv f32 temporaries
    )
    vmem_limit = int(min(max(2 * vmem_need + (4 << 20), 32 << 20), 64 << 20))

    cost = pl.CostEstimate(
        flops=int(6 * B * N * D * H + 12 * B * N * H),
        transcendentals=int(B * N * H),
        bytes_accessed=int(2 * B * N * D * xb + (3 * D * H + 2 * H + 2 * D) * wb
                           + 2 * B * H * 4),
    )

    grid = (B, NT, HT)

    def build_in_specs(single_buffer):
        inv = 1 if single_buffer else None                # grid-invariant small params
        w_mode = 1 if (single_buffer and HT == 1) else None   # weights invariant iff HT==1
        return [
            _spec((1, TM, D), lambda b, i, h: (b, i, 0)),             # x rows
            _spec((1, 1, TH), lambda b, i, h: (b, 0, h)),             # shift (per batch)
            _spec((1, 1, TH), lambda b, i, h: (b, 0, h)),             # scale + 1
            _spec((1, D), lambda b, i, h: (0, 0), inv),               # LN gamma
            _spec((1, D), lambda b, i, h: (0, 0), inv),               # LN beta
            _spec((D, TH), lambda b, i, h: (0, h), w_mode),           # dense_1 value W
            _spec((1, TH), lambda b, i, h: (0, h), w_mode),           # dense_1 value b
            _spec((D, TH), lambda b, i, h: (0, h), w_mode),           # dense_1 gate  W
            _spec((1, TH), lambda b, i, h: (0, h), w_mode),           # dense_1 gate  b
            _spec((TH, D), lambda b, i, h: (h, 0), w_mode),           # dense_2 W
            _spec((1, D), lambda b, i, h: (0, 0), inv),               # dense_2 b
        ]

    def run(single_buffer):
        return pl.pallas_call(
            ffpp_kernel,
            out_shape=jax.ShapeDtypeStruct((B, N, D), x.dtype),
            grid_spec=pltpu.PrefetchScalarGridSpec(
                num_scalar_prefetch=0,
                grid=grid,
                in_specs=build_in_specs(single_buffer),
                out_specs=pl.BlockSpec((1, TM, D), lambda b, i, h: (b, i, 0)),
                scratch_shapes=[pltpu.VMEM((TM, D), mm_dtype),     # cached LayerNorm out
                                pltpu.VMEM((TM, D), jnp.float32)], # dense_2 accumulator
            ),
            compiler_params=pltpu.CompilerParams(
                dimension_semantics=("parallel", "parallel", "arbitrary"),
                vmem_limit_bytes=vmem_limit),
            cost_estimate=cost,
        )(x, shift, scale1, gamma2, beta2, w1u, b1u, w1g, b1g, w2c, b2r)

    try:
        return run(True)
    except Exception:
        # pl.Buffered(1) not supported on this jax/libtpu -> plain double buffering.
        return run(False)


def reference(x, t, params):
    gamma, beta, w1, b1, wc, bc, w2, b2 = params
    mean = jnp.mean(x, axis=-1, keepdims=True)
    var = jnp.mean((x - mean) ** 2, axis=-1, keepdims=True)
    xn = (x - mean) / jnp.sqrt(var + LN_EPS) * gamma.reshape(-1) + beta.reshape(-1)
    h = xn @ w1 + b1.reshape(-1)
    H = h.shape[-1] // 2
    u, g = h[..., :H], h[..., H:]
    h = u * (0.5 * g * (1.0 + lax.erf(g * INV_SQRT2)))
    cond = t @ wc + bc.reshape(-1)                               # (B, 2H)
    shift, scale = cond[:, None, :H], cond[:, None, H:]
    h = shift + h * (scale + 1.0)
    return h @ w2 + b2.reshape(-1)


if __name__ == "__main__":
    def make_inputs(key, B, N, D, T_EMB, H):
        H2 = 2 * H
        ks = jax.random.split(key, 8)
        x = jax.random.normal(ks[0], (B, N, D), dtype=jnp.float32)
        t = jax.random.normal(ks[1], (B, T_EMB), dtype=jnp.float32)
        gamma = jnp.ones((1, D), jnp.float32)
        beta = jnp.zeros((1, D), jnp.float32)
        w1 = jax.random.normal(ks[2], (D, H2), jnp.float32) * 0.05
        b1 = jax.random.normal(ks[3], (1, H2), jnp.float32) * 0.01
        wc = jax.random.normal(ks[4], (T_EMB, H2), jnp.float32) * 0.05
        bc = jax.random.normal(ks[5], (1, H2), jnp.float32) * 0.01
        w2 = jax.random.normal(ks[6], (H, D), jnp.float32) * 0.05
        b2 = jax.random.normal(ks[7], (1, D), jnp.float32) * 0.01
        return x, t, (gamma, beta, w1, b1, wc, bc, w2, b2)

    # --- config 1: module defaults (dim=32, mult=4), single H tile -------------
    B, N, D, T_EMB, MULT = 2, 8, 32, 16, 4
    x, t, params = make_inputs(jax.random.PRNGKey(0), B, N, D, T_EMB, D * MULT)
    ref = reference(x, t, params)

    out_f32 = jax.block_until_ready(feed_forward_pp(x, t, params, matmul_dtype=None))
    np.testing.assert_allclose(np.asarray(out_f32), np.asarray(ref),
                               rtol=2e-5, atol=2e-5)

    out_bf16 = jax.block_until_ready(feed_forward_pp(x, t, params))  # bf16 MXU default
    np.testing.assert_allclose(np.asarray(out_bf16), np.asarray(ref),
                               rtol=5e-2, atol=5e-2)

    # --- config 2: H-tiled (HT=2), multi row-tile, ragged N (masked tail rows) -
    B2, N2, D2, MULT2 = 2, 12, 32, 8
    x2, t2, params2 = make_inputs(jax.random.PRNGKey(1), B2, N2, D2, T_EMB, D2 * MULT2)
    ref2 = reference(x2, t2, params2)
    out2 = jax.block_until_ready(
        feed_forward_pp(x2, t2, params2, tile_rows=8, tile_h=128, matmul_dtype=None))
    np.testing.assert_allclose(np.asarray(out2), np.asarray(ref2),
                               rtol=2e-5, atol=2e-5)

    print("KERNEL_OK")
</pallas_src>

<mosaic_0001>
module attributes {stable_mosaic.version = 11 : i64} {
  func.func @ffpp_kernel(%arg0: i32, %arg1: i32, %arg2: i32, %arg3: memref<1x8x32xf32, #tpu.memory_space<vmem>>, %arg4: memref<1x1x128xf32, #tpu.memory_space<vmem>>, %arg5: memref<1x1x128xf32, #tpu.memory_space<vmem>>, %arg6: memref<1x32xf32, #tpu.memory_space<vmem>>, %arg7: memref<1x32xf32, #tpu.memory_space<vmem>>, %arg8: memref<32x128xf32, #tpu.memory_space<vmem>>, %arg9: memref<1x128xf32, #tpu.memory_space<vmem>>, %arg10: memref<32x128xf32, #tpu.memory_space<vmem>>, %arg11: memref<1x128xf32, #tpu.memory_space<vmem>>, %arg12: memref<128x32xf32, #tpu.memory_space<vmem>>, %arg13: memref<1x32xf32, #tpu.memory_space<vmem>>, %arg14: memref<1x8x32xf32, #tpu.memory_space<vmem>>, %arg15: memref<8x32xf32, #tpu.memory_space<vmem>>, %arg16: memref<8x32xf32, #tpu.memory_space<vmem>>) attributes {dimension_semantics = [#tpu.dimension_semantics<parallel>, #tpu.dimension_semantics<parallel>, #tpu.dimension_semantics<arbitrary>], iteration_bounds = array<i64: 2, 1, 1>, scalar_prefetch = 0 : i64, scratch_operands = 2 : i64, tpu.core_type = #tpu.core_type<tc>, window_params = [{transform_indices = @transform_0, window_bounds = array<i64: 1, 8, 32>}, {transform_indices = @transform_1, window_bounds = array<i64: 1, 1, 128>}, {transform_indices = @transform_2, window_bounds = array<i64: 1, 1, 128>}, {pipeline_mode = #tpu.pipeline_mode<synchronous>, transform_indices = @transform_3, window_bounds = array<i64: 1, 32>}, {pipeline_mode = #tpu.pipeline_mode<synchronous>, transform_indices = @transform_4, window_bounds = array<i64: 1, 32>}, {pipeline_mode = #tpu.pipeline_mode<synchronous>, transform_indices = @transform_5, window_bounds = array<i64: 32, 128>}, {pipeline_mode = #tpu.pipeline_mode<synchronous>, transform_indices = @transform_6, window_bounds = array<i64: 1, 128>}, {pipeline_mode = #tpu.pipeline_mode<synchronous>, transform_indices = @transform_7, window_bounds = array<i64: 32, 128>}, {pipeline_mode = #tpu.pipeline_mode<synchronous>, transform_indices = @transform_8, window_bounds = array<i64: 1, 128>}, {pipeline_mode = #tpu.pipeline_mode<synchronous>, transform_indices = @transform_9, window_bounds = array<i64: 128, 32>}, {pipeline_mode = #tpu.pipeline_mode<synchronous>, transform_indices = @transform_10, window_bounds = array<i64: 1, 32>}, {transform_indices = @transform_11, window_bounds = array<i64: 1, 8, 32>}]} {
    %c0_i32 = arith.constant 0 : i32
    %0 = arith.cmpi eq, %arg2, %c0_i32 : i32
    %1 = arith.extui %0 : i1 to i32
    %c0_i32_0 = arith.constant 0 : i32
    %2 = arith.cmpi ne, %1, %c0_i32_0 : i32
    scf.if %2 {
      %c0_29 = arith.constant 0 : index
      %c0_30 = arith.constant 0 : index
      %c0_31 = arith.constant 0 : index
      %39 = vector.load %arg3[%c0_29, %c0_30, %c0_31] : memref<1x8x32xf32, #tpu.memory_space<vmem>>, vector<1x8x32xf32>
      %40 = vector.shape_cast %39 : vector<1x8x32xf32> to vector<8x32xf32>
      %cst_32 = arith.constant dense<0.000000e+00> : vector<8xf32>
      %41 = vector.multi_reduction <add>, %40, %cst_32 [1] : vector<8x32xf32> to vector<8xf32>
      %42 = vector.shape_cast %41 : vector<8xf32> to vector<8x1xf32>
      %cst_33 = arith.constant 3.200000e+01 : f32
      %43 = vector.broadcast %cst_33 : f32 to vector<8x1xf32>
      %44 = arith.divf %42, %43 : vector<8x1xf32>
      %45 = vector.broadcast %44 : vector<8x1xf32> to vector<8x32xf32>
      %46 = arith.subf %40, %45 : vector<8x32xf32>
      %47 = arith.mulf %46, %46 : vector<8x32xf32>
      %cst_34 = arith.constant dense<0.000000e+00> : vector<8xf32>
      %48 = vector.multi_reduction <add>, %47, %cst_34 [1] : vector<8x32xf32> to vector<8xf32>
      %49 = vector.shape_cast %48 : vector<8xf32> to vector<8x1xf32>
      %cst_35 = arith.constant 3.200000e+01 : f32
      %50 = vector.broadcast %cst_35 : f32 to vector<8x1xf32>
      %51 = arith.divf %49, %50 : vector<8x1xf32>
      %cst_36 = arith.constant 9.99999974E-6 : f32
      %52 = vector.broadcast %cst_36 : f32 to vector<8x1xf32>
      %53 = arith.addf %51, %52 : vector<8x1xf32>
      %54 = math.rsqrt %53 : vector<8x1xf32>
      %55 = vector.broadcast %54 : vector<8x1xf32> to vector<8x32xf32>
      %56 = arith.mulf %46, %55 : vector<8x32xf32>
      %c0_37 = arith.constant 0 : index
      %c0_38 = arith.constant 0 : index
      %57 = vector.load %arg6[%c0_37, %c0_38] : memref<1x32xf32, #tpu.memory_space<vmem>>, vector<1x32xf32>
      %58 = vector.broadcast %57 : vector<1x32xf32> to vector<8x32xf32>
      %59 = arith.mulf %56, %58 : vector<8x32xf32>
      %c0_39 = arith.constant 0 : index
      %c0_40 = arith.constant 0 : index
      %60 = vector.load %arg7[%c0_39, %c0_40] : memref<1x32xf32, #tpu.memory_space<vmem>>, vector<1x32xf32>
      %61 = vector.broadcast %60 : vector<1x32xf32> to vector<8x32xf32>
      %62 = arith.addf %59, %61 : vector<8x32xf32>
      %c0_41 = arith.constant 0 : index
      %c0_42 = arith.constant 0 : index
      %63 = vector.load %arg15[%c0_41, %c0_42] : memref<8x32xf32, #tpu.memory_space<vmem>>, vector<8x32xf32>
      tpu.vector_store %arg15[%c0_41, %c0_42], %62 {strides = array<i32>} : memref<8x32xf32, #tpu.memory_space<vmem>>, vector<8x32xf32>,
      %cst_43 = arith.constant 0.000000e+00 : f32
      %64 = vector.broadcast %cst_43 : f32 to vector<8x32xf32>
      %c0_44 = arith.constant 0 : index
      %c0_45 = arith.constant 0 : index
      %65 = vector.load %arg16[%c0_44, %c0_45] : memref<8x32xf32, #tpu.memory_space<vmem>>, vector<8x32xf32>
      tpu.vector_store %arg16[%c0_44, %c0_45], %64 {strides = array<i32>} : memref<8x32xf32, #tpu.memory_space<vmem>>, vector<8x32xf32>,
    } else {
    }
    %c0 = arith.constant 0 : index
    %c0_1 = arith.constant 0 : index
    %3 = vector.load %arg15[%c0, %c0_1] : memref<8x32xf32, #tpu.memory_space<vmem>>, vector<8x32xf32>
    %c0_2 = arith.constant 0 : index
    %c0_3 = arith.constant 0 : index
    %4 = vector.load %arg8[%c0_2, %c0_3] : memref<32x128xf32, #tpu.memory_space<vmem>>, vector<32x128xf32>
    %cst = arith.constant dense<0.000000e+00> : vector<8x128xf32>
    %5 = tpu.matmul %3, %4, %cst {dimension_numbers = #tpu.dot_dimension_numbers<[1], [0], [0], [1], [0, 0, 1, 1], [], []>} : vector<8x32xf32>, vector<32x128xf32>, vector<8x128xf32> -> vector<8x128xf32>
    %c0_4 = arith.constant 0 : index
    %c0_5 = arith.constant 0 : index
    %6 = vector.load %arg9[%c0_4, %c0_5] : memref<1x128xf32, #tpu.memory_space<vmem>>, vector<1x128xf32>
    %7 = vector.broadcast %6 : vector<1x128xf32> to vector<8x128xf32>
    %8 = arith.addf %5, %7 : vector<8x128xf32>
    %c0_6 = arith.constant 0 : index
    %c0_7 = arith.constant 0 : index
    %9 = vector.load %arg10[%c0_6, %c0_7] : memref<32x128xf32, #tpu.memory_space<vmem>>, vector<32x128xf32>
    %cst_8 = arith.constant dense<0.000000e+00> : vector<8x128xf32>
    %10 = tpu.matmul %3, %9, %cst_8 {dimension_numbers = #tpu.dot_dimension_numbers<[1], [0], [0], [1], [0, 0, 1, 1], [], []>} : vector<8x32xf32>, vector<32x128xf32>, vector<8x128xf32> -> vector<8x128xf32>
    %c0_9 = arith.constant 0 : index
    %c0_10 = arith.constant 0 : index
    %11 = vector.load %arg11[%c0_9, %c0_10] : memref<1x128xf32, #tpu.memory_space<vmem>>, vector<1x128xf32>
    %12 = vector.broadcast %11 : vector<1x128xf32> to vector<8x128xf32>
    %13 = arith.addf %10, %12 : vector<8x128xf32>
    %cst_11 = arith.constant 5.000000e-01 : f32
    %14 = vector.broadcast %cst_11 : f32 to vector<8x128xf32>
    %15 = arith.mulf %14, %13 : vector<8x128xf32>
    %cst_12 = arith.constant 0.707106769 : f32
    %16 = vector.broadcast %cst_12 : f32 to vector<8x128xf32>
    %17 = arith.mulf %13, %16 : vector<8x128xf32>
    %18 = math.erf %17 : vector<8x128xf32>
    %cst_13 = arith.constant 1.000000e+00 : f32
    %19 = vector.broadcast %cst_13 : f32 to vector<8x128xf32>
    %20 = arith.addf %19, %18 : vector<8x128xf32>
    %21 = arith.mulf %15, %20 : vector<8x128xf32>
    %22 = arith.mulf %8, %21 : vector<8x128xf32>
    %c0_14 = arith.constant 0 : index
    %c0_15 = arith.constant 0 : index
    %c0_16 = arith.constant 0 : index
    %23 = vector.load %arg4[%c0_14, %c0_15, %c0_16] : memref<1x1x128xf32, #tpu.memory_space<vmem>>, vector<1x1x128xf32>
    %24 = vector.shape_cast %23 : vector<1x1x128xf32> to vector<1x128xf32>
    %c0_17 = arith.constant 0 : index
    %c0_18 = arith.constant 0 : index
    %c0_19 = arith.constant 0 : index
    %25 = vector.load %arg5[%c0_17, %c0_18, %c0_19] : memref<1x1x128xf32, #tpu.memory_space<vmem>>, vector<1x1x128xf32>
    %26 = vector.shape_cast %25 : vector<1x1x128xf32> to vector<1x128xf32>
    %27 = vector.broadcast %26 : vector<1x128xf32> to vector<8x128xf32>
    %28 = arith.mulf %22, %27 : vector<8x128xf32>
    %29 = vector.broadcast %24 : vector<1x128xf32> to vector<8x128xf32>
    %30 = arith.addf %29, %28 : vector<8x128xf32>
    %c0_20 = arith.constant 0 : index
    %c0_21 = arith.constant 0 : index
    %31 = vector.load %arg16[%c0_20, %c0_21] : memref<8x32xf32, #tpu.memory_space<vmem>>, vector<8x32xf32>
    %c0_22 = arith.constant 0 : index
    %c0_23 = arith.constant 0 : index
    %32 = vector.load %arg12[%c0_22, %c0_23] : memref<128x32xf32, #tpu.memory_space<vmem>>, vector<128x32xf32>
    %cst_24 = arith.constant dense<0.000000e+00> : vector<8x32xf32>
    %33 = tpu.matmul %30, %32, %cst_24 {dimension_numbers = #tpu.dot_dimension_numbers<[1], [0], [0], [1], [0, 0, 1, 1], [], []>} : vector<8x128xf32>, vector<128x32xf32>, vector<8x32xf32> -> vector<8x32xf32>
    %34 = arith.addf %31, %33 : vector<8x32xf32>
    %c0_25 = arith.constant 0 : index
    %c0_26 = arith.constant 0 : index
    %35 = vector.load %arg16[%c0_25, %c0_26] : memref<8x32xf32, #tpu.memory_space<vmem>>, vector<8x32xf32>
    tpu.vector_store %arg16[%c0_25, %c0_26], %34 {strides = array<i32>} : memref<8x32xf32, #tpu.memory_space<vmem>>, vector<8x32xf32>,
    %c0_i32_27 = arith.constant 0 : i32
    %36 = arith.cmpi eq, %arg2, %c0_i32_27 : i32
    %37 = arith.extui %36 : i1 to i32
    %c0_i32_28 = arith.constant 0 : i32
    %38 = arith.cmpi ne, %37, %c0_i32_28 : i32
    scf.if %38 {
      %c0_29 = arith.constant 0 : index
      %c0_30 = arith.constant 0 : index
      %39 = vector.load %arg16[%c0_29, %c0_30] : memref<8x32xf32, #tpu.memory_space<vmem>>, vector<8x32xf32>
      %c0_31 = arith.constant 0 : index
      %c0_32 = arith.constant 0 : index
      %40 = vector.load %arg13[%c0_31, %c0_32] : memref<1x32xf32, #tpu.memory_space<vmem>>, vector<1x32xf32>
      %41 = vector.broadcast %40 : vector<1x32xf32> to vector<8x32xf32>
      %42 = arith.addf %39, %41 : vector<8x32xf32>
      %c0_33 = arith.constant 0 : index
      %c0_34 = arith.constant 0 : index
      %c0_35 = arith.constant 0 : index
      %43 = vector.load %arg14[%c0_33, %c0_34, %c0_35] : memref<1x8x32xf32, #tpu.memory_space<vmem>>, vector<1x8x32xf32>
      %44 = vector.shape_cast %43 : vector<1x8x32xf32> to vector<8x32xf32>
      %45 = vector.shape_cast %42 : vector<8x32xf32> to vector<1x8x32xf32>
      tpu.vector_store %arg14[%c0_33, %c0_34, %c0_35], %45 {strides = array<i32>} : memref<1x8x32xf32, #tpu.memory_space<vmem>>, vector<1x8x32xf32>,
    } else {
    }
    return
  }
  func.func @transform_0(%arg0: i32, %arg1: i32, %arg2: i32) -> (i32, i32, i32) {
    %c0_i32 = arith.constant 0 : i32
    %c0_i32_0 = arith.constant 0 : i32
    return %arg0, %arg1, %c0_i32 : i32, i32, i32
  }
  func.func @transform_1(%arg0: i32, %arg1: i32, %arg2: i32) -> (i32, i32, i32) {
    %c0_i32 = arith.constant 0 : i32
    %c0_i32_0 = arith.constant 0 : i32
    return %arg0, %c0_i32, %arg2 : i32, i32, i32
  }
  func.func @transform_2(%arg0: i32, %arg1: i32, %arg2: i32) -> (i32, i32, i32) {
    %c0_i32 = arith.constant 0 : i32
    %c0_i32_0 = arith.constant 0 : i32
    return %arg0, %c0_i32, %arg2 : i32, i32, i32
  }
  func.func @transform_3(%arg0: i32, %arg1: i32, %arg2: i32) -> (i32, i32) {
    %c0_i32 = arith.constant 0 : i32
    %c0_i32_0 = arith.constant 0 : i32
    %c0_i32_1 = arith.constant 0 : i32
    return %c0_i32, %c0_i32_0 : i32, i32
  }
  func.func @transform_4(%arg0: i32, %arg1: i32, %arg2: i32) -> (i32, i32) {
    %c0_i32 = arith.constant 0 : i32
    %c0_i32_0 = arith.constant 0 : i32
    %c0_i32_1 = arith.constant 0 : i32
    return %c0_i32, %c0_i32_0 : i32, i32
  }
  func.func @transform_5(%arg0: i32, %arg1: i32, %arg2: i32) -> (i32, i32) {
    %c0_i32 = arith.constant 0 : i32
    %c0_i32_0 = arith.constant 0 : i32
    return %c0_i32, %arg2 : i32, i32
  }
  func.func @transform_6(%arg0: i32, %arg1: i32, %arg2: i32) -> (i32, i32) {
    %c0_i32 = arith.constant 0 : i32
    %c0_i32_0 = arith.constant 0 : i32
    return %c0_i32, %arg2 : i32, i32
  }
  func.func @transform_7(%arg0: i32, %arg1: i32, %arg2: i32) -> (i32, i32) {
    %c0_i32 = arith.constant 0 : i32
    %c0_i32_0 = arith.constant 0 : i32
    return %c0_i32, %arg2 : i32, i32
  }
  func.func @transform_8(%arg0: i32, %arg1: i32, %arg2: i32) -> (i32, i32) {
    %c0_i32 = arith.constant 0 : i32
    %c0_i32_0 = arith.constant 0 : i32
    return %c0_i32, %arg2 : i32, i32
  }
  func.func @transform_9(%arg0: i32, %arg1: i32, %arg2: i32) -> (i32, i32) {
    %c0_i32 = arith.constant 0 : i32
    %c0_i32_0 = arith.constant 0 : i32
    return %arg2, %c0_i32 : i32, i32
  }
  func.func @transform_10(%arg0: i32, %arg1: i32, %arg2: i32) -> (i32, i32) {
    %c0_i32 = arith.constant 0 : i32
    %c0_i32_0 = arith.constant 0 : i32
    %c0_i32_1 = arith.constant 0 : i32
    return %c0_i32, %c0_i32_0 : i32, i32
  }
  func.func @transform_11(%arg0: i32, %arg1: i32, %arg2: i32) -> (i32, i32, i32) {
    %c0_i32 = arith.constant 0 : i32
    %c0_i32_0 = arith.constant 0 : i32
    return %arg0, %arg1, %c0_i32 : i32, i32, i32
  }
}

module attributes {stable_mosaic.version = 11 : i64} {
  func.func @ffpp_kernel(%arg0: i32, %arg1: i32, %arg2: i32, %arg3: memref<1x8x32xf32, #tpu.memory_space<vmem>>, %arg4: memref<1x1x128xf32, #tpu.memory_space<vmem>>, %arg5: memref<1x1x128xf32, #tpu.memory_space<vmem>>, %arg6: memref<1x32xf32, #tpu.memory_space<vmem>>, %arg7: memref<1x32xf32, #tpu.memory_space<vmem>>, %arg8: memref<32x128xf32, #tpu.memory_space<vmem>>, %arg9: memref<1x128xf32, #tpu.memory_space<vmem>>, %arg10: memref<32x128xf32, #tpu.memory_space<vmem>>, %arg11: memref<1x128xf32, #tpu.memory_space<vmem>>, %arg12: memref<128x32xf32, #tpu.memory_space<vmem>>, %arg13: memref<1x32xf32, #tpu.memory_space<vmem>>, %arg14: memref<1x8x32xf32, #tpu.memory_space<vmem>>, %arg15: memref<8x32xf32, #tpu.memory_space<vmem>>, %arg16: memref<8x32xf32, #tpu.memory_space<vmem>>) attributes {dimension_semantics = [#tpu.dimension_semantics<parallel>, #tpu.dimension_semantics<parallel>, #tpu.dimension_semantics<arbitrary>], iteration_bounds = array<i64: 2, 1, 1>, scalar_prefetch = 0 : i64, scratch_operands = 2 : i64, tpu.core_type = #tpu.core_type<tc>, window_params = [{transform_indices = @transform_0, window_bounds = array<i64: 1, 8, 32>}, {transform_indices = @transform_1, window_bounds = array<i64: 1, 1, 128>}, {transform_indices = @transform_2, window_bounds = array<i64: 1, 1, 128>}, {pipeline_mode = #tpu.pipeline_mode<synchronous>, transform_indices = @transform_3, window_bounds = array<i64: 1, 32>}, {pipeline_mode = #tpu.pipeline_mode<synchronous>, transform_indices = @transform_4, window_bounds = array<i64: 1, 32>}, {transform_indices = @transform_5, window_bounds = array<i64: 32, 128>}, {transform_indices = @transform_6, window_bounds = array<i64: 1, 128>}, {transform_indices = @transform_7, window_bounds = array<i64: 32, 128>}, {transform_indices = @transform_8, window_bounds = array<i64: 1, 128>}, {transform_indices = @transform_9, window_bounds = array<i64: 128, 32>}, {pipeline_mode = #tpu.pipeline_mode<synchronous>, transform_indices = @transform_10, window_bounds = array<i64: 1, 32>}, {transform_indices = @transform_11, window_bounds = array<i64: 1, 8, 32>}]} {
    %c0_i32 = arith.constant 0 : i32
    %0 = arith.cmpi eq, %arg2, %c0_i32 : i32
    %1 = arith.extui %0 : i1 to i32
    %c0_i32_0 = arith.constant 0 : i32
    %2 = arith.cmpi ne, %1, %c0_i32_0 : i32
    scf.if %2 {
      %c0_29 = arith.constant 0 : index
      %c0_30 = arith.constant 0 : index
      %c0_31 = arith.constant 0 : index
      %39 = vector.load %arg3[%c0_29, %c0_30, %c0_31] : memref<1x8x32xf32, #tpu.memory_space<vmem>>, vector<1x8x32xf32>
      %40 = vector.shape_cast %39 : vector<1x8x32xf32> to vector<8x32xf32>
      %cst_32 = arith.constant dense<0.000000e+00> : vector<8xf32>
      %41 = vector.multi_reduction <add>, %40, %cst_32 [1] : vector<8x32xf32> to vector<8xf32>
      %42 = vector.shape_cast %41 : vector<8xf32> to vector<8x1xf32>
      %cst_33 = arith.constant 3.200000e+01 : f32
      %43 = vector.broadcast %cst_33 : f32 to vector<8x1xf32>
      %44 = arith.divf %42, %43 : vector<8x1xf32>
      %45 = vector.broadcast %44 : vector<8x1xf32> to vector<8x32xf32>
      %46 = arith.subf %40, %45 : vector<8x32xf32>
      %47 = arith.mulf %46, %46 : vector<8x32xf32>
      %cst_34 = arith.constant dense<0.000000e+00> : vector<8xf32>
      %48 = vector.multi_reduction <add>, %47, %cst_34 [1] : vector<8x32xf32> to vector<8xf32>
      %49 = vector.shape_cast %48 : vector<8xf32> to vector<8x1xf32>
      %cst_35 = arith.constant 3.200000e+01 : f32
      %50 = vector.broadcast %cst_35 : f32 to vector<8x1xf32>
      %51 = arith.divf %49, %50 : vector<8x1xf32>
      %cst_36 = arith.constant 9.99999974E-6 : f32
      %52 = vector.broadcast %cst_36 : f32 to vector<8x1xf32>
      %53 = arith.addf %51, %52 : vector<8x1xf32>
      %54 = math.rsqrt %53 : vector<8x1xf32>
      %55 = vector.broadcast %54 : vector<8x1xf32> to vector<8x32xf32>
      %56 = arith.mulf %46, %55 : vector<8x32xf32>
      %c0_37 = arith.constant 0 : index
      %c0_38 = arith.constant 0 : index
      %57 = vector.load %arg6[%c0_37, %c0_38] : memref<1x32xf32, #tpu.memory_space<vmem>>, vector<1x32xf32>
      %58 = vector.broadcast %57 : vector<1x32xf32> to vector<8x32xf32>
      %59 = arith.mulf %56, %58 : vector<8x32xf32>
      %c0_39 = arith.constant 0 : index
      %c0_40 = arith.constant 0 : index
      %60 = vector.load %arg7[%c0_39, %c0_40] : memref<1x32xf32, #tpu.memory_space<vmem>>, vector<1x32xf32>
      %61 = vector.broadcast %60 : vector<1x32xf32> to vector<8x32xf32>
      %62 = arith.addf %59, %61 : vector<8x32xf32>
      %c0_41 = arith.constant 0 : index
      %c0_42 = arith.constant 0 : index
      %63 = vector.load %arg15[%c0_41, %c0_42] : memref<8x32xf32, #tpu.memory_space<vmem>>, vector<8x32xf32>
      tpu.vector_store %arg15[%c0_41, %c0_42], %62 {strides = array<i32>} : memref<8x32xf32, #tpu.memory_space<vmem>>, vector<8x32xf32>,
      %cst_43 = arith.constant 0.000000e+00 : f32
      %64 = vector.broadcast %cst_43 : f32 to vector<8x32xf32>
      %c0_44 = arith.constant 0 : index
      %c0_45 = arith.constant 0 : index
      %65 = vector.load %arg16[%c0_44, %c0_45] : memref<8x32xf32, #tpu.memory_space<vmem>>, vector<8x32xf32>
      tpu.vector_store %arg16[%c0_44, %c0_45], %64 {strides = array<i32>} : memref<8x32xf32, #tpu.memory_space<vmem>>, vector<8x32xf32>,
    } else {
    }
    %c0 = arith.constant 0 : index
    %c0_1 = arith.constant 0 : index
    %3 = vector.load %arg15[%c0, %c0_1] : memref<8x32xf32, #tpu.memory_space<vmem>>, vector<8x32xf32>
    %c0_2 = arith.constant 0 : index
    %c0_3 = arith.constant 0 : index
    %4 = vector.load %arg8[%c0_2, %c0_3] : memref<32x128xf32, #tpu.memory_space<vmem>>, vector<32x128xf32>
    %cst = arith.constant dense<0.000000e+00> : vector<8x128xf32>
    %5 = tpu.matmul %3, %4, %cst {dimension_numbers = #tpu.dot_dimension_numbers<[1], [0], [0], [1], [0, 0, 1, 1], [], []>} : vector<8x32xf32>, vector<32x128xf32>, vector<8x128xf32> -> vector<8x128xf32>
    %c0_4 = arith.constant 0 : index
    %c0_5 = arith.constant 0 : index
    %6 = vector.load %arg9[%c0_4, %c0_5] : memref<1x128xf32, #tpu.memory_space<vmem>>, vector<1x128xf32>
    %7 = vector.broadcast %6 : vector<1x128xf32> to vector<8x128xf32>
    %8 = arith.addf %5, %7 : vector<8x128xf32>
    %c0_6 = arith.constant 0 : index
    %c0_7 = arith.constant 0 : index
    %9 = vector.load %arg10[%c0_6, %c0_7] : memref<32x128xf32, #tpu.memory_space<vmem>>, vector<32x128xf32>
    %cst_8 = arith.constant dense<0.000000e+00> : vector<8x128xf32>
    %10 = tpu.matmul %3, %9, %cst_8 {dimension_numbers = #tpu.dot_dimension_numbers<[1], [0], [0], [1], [0, 0, 1, 1], [], []>} : vector<8x32xf32>, vector<32x128xf32>, vector<8x128xf32> -> vector<8x128xf32>
    %c0_9 = arith.constant 0 : index
    %c0_10 = arith.constant 0 : index
    %11 = vector.load %arg11[%c0_9, %c0_10] : memref<1x128xf32, #tpu.memory_space<vmem>>, vector<1x128xf32>
    %12 = vector.broadcast %11 : vector<1x128xf32> to vector<8x128xf32>
    %13 = arith.addf %10, %12 : vector<8x128xf32>
    %cst_11 = arith.constant 5.000000e-01 : f32
    %14 = vector.broadcast %cst_11 : f32 to vector<8x128xf32>
    %15 = arith.mulf %14, %13 : vector<8x128xf32>
    %cst_12 = arith.constant 0.707106769 : f32
    %16 = vector.broadcast %cst_12 : f32 to vector<8x128xf32>
    %17 = arith.mulf %13, %16 : vector<8x128xf32>
    %18 = math.erf %17 : vector<8x128xf32>
    %cst_13 = arith.constant 1.000000e+00 : f32
    %19 = vector.broadcast %cst_13 : f32 to vector<8x128xf32>
    %20 = arith.addf %19, %18 : vector<8x128xf32>
    %21 = arith.mulf %15, %20 : vector<8x128xf32>
    %22 = arith.mulf %8, %21 : vector<8x128xf32>
    %c0_14 = arith.constant 0 : index
    %c0_15 = arith.constant 0 : index
    %c0_16 = arith.constant 0 : index
    %23 = vector.load %arg4[%c0_14, %c0_15, %c0_16] : memref<1x1x128xf32, #tpu.memory_space<vmem>>, vector<1x1x128xf32>
    %24 = vector.shape_cast %23 : vector<1x1x128xf32> to vector<1x128xf32>
    %c0_17 = arith.constant 0 : index
    %c0_18 = arith.constant 0 : index
    %c0_19 = arith.constant 0 : index
    %25 = vector.load %arg5[%c0_17, %c0_18, %c0_19] : memref<1x1x128xf32, #tpu.memory_space<vmem>>, vector<1x1x128xf32>
    %26 = vector.shape_cast %25 : vector<1x1x128xf32> to vector<1x128xf32>
    %27 = vector.broadcast %26 : vector<1x128xf32> to vector<8x128xf32>
    %28 = arith.mulf %22, %27 : vector<8x128xf32>
    %29 = vector.broadcast %24 : vector<1x128xf32> to vector<8x128xf32>
    %30 = arith.addf %29, %28 : vector<8x128xf32>
    %c0_20 = arith.constant 0 : index
    %c0_21 = arith.constant 0 : index
    %31 = vector.load %arg16[%c0_20, %c0_21] : memref<8x32xf32, #tpu.memory_space<vmem>>, vector<8x32xf32>
    %c0_22 = arith.constant 0 : index
    %c0_23 = arith.constant 0 : index
    %32 = vector.load %arg12[%c0_22, %c0_23] : memref<128x32xf32, #tpu.memory_space<vmem>>, vector<128x32xf32>
    %cst_24 = arith.constant dense<0.000000e+00> : vector<8x32xf32>
    %33 = tpu.matmul %30, %32, %cst_24 {dimension_numbers = #tpu.dot_dimension_numbers<[1], [0], [0], [1], [0, 0, 1, 1], [], []>} : vector<8x128xf32>, vector<128x32xf32>, vector<8x32xf32> -> vector<8x32xf32>
    %34 = arith.addf %31, %33 : vector<8x32xf32>
    %c0_25 = arith.constant 0 : index
    %c0_26 = arith.constant 0 : index
    %35 = vector.load %arg16[%c0_25, %c0_26] : memref<8x32xf32, #tpu.memory_space<vmem>>, vector<8x32xf32>
    tpu.vector_store %arg16[%c0_25, %c0_26], %34 {strides = array<i32>} : memref<8x32xf32, #tpu.memory_space<vmem>>, vector<8x32xf32>,
    %c0_i32_27 = arith.constant 0 : i32
    %36 = arith.cmpi eq, %arg2, %c0_i32_27 : i32
    %37 = arith.extui %36 : i1 to i32
    %c0_i32_28 = arith.constant 0 : i32
    %38 = arith.cmpi ne, %37, %c0_i32_28 : i32
    scf.if %38 {
      %c0_29 = arith.constant 0 : index
      %c0_30 = arith.constant 0 : index
      %39 = vector.load %arg16[%c0_29, %c0_30] : memref<8x32xf32, #tpu.memory_space<vmem>>, vector<8x32xf32>
      %c0_31 = arith.constant 0 : index
      %c0_32 = arith.constant 0 : index
      %40 = vector.load %arg13[%c0_31, %c0_32] : memref<1x32xf32, #tpu.memory_space<vmem>>, vector<1x32xf32>
      %41 = vector.broadcast %40 : vector<1x32xf32> to vector<8x32xf32>
      %42 = arith.addf %39, %41 : vector<8x32xf32>
      %c0_33 = arith.constant 0 : index
      %c0_34 = arith.constant 0 : index
      %c0_35 = arith.constant 0 : index
      %43 = vector.load %arg14[%c0_33, %c0_34, %c0_35] : memref<1x8x32xf32, #tpu.memory_space<vmem>>, vector<1x8x32xf32>
      %44 = vector.shape_cast %43 : vector<1x8x32xf32> to vector<8x32xf32>
      %45 = vector.shape_cast %42 : vector<8x32xf32> to vector<1x8x32xf32>
      tpu.vector_store %arg14[%c0_33, %c0_34, %c0_35], %45 {strides = array<i32>} : memref<1x8x32xf32, #tpu.memory_space<vmem>>, vector<1x8x32xf32>,
    } else {
    }
    return
  }
  func.func @transform_0(%arg0: i32, %arg1: i32, %arg2: i32) -> (i32, i32, i32) {
    %c0_i32 = arith.constant 0 : i32
    %c0_i32_0 = arith.constant 0 : i32
    return %arg0, %arg1, %c0_i32 : i32, i32, i32
  }
  func.func @transform_1(%arg0: i32, %arg1: i32, %arg2: i32) -> (i32, i32, i32) {
    %c0_i32 = arith.constant 0 : i32
    %c0_i32_0 = arith.constant 0 : i32
    return %arg0, %c0_i32, %arg2 : i32, i32, i32
  }
  func.func @transform_2(%arg0: i32, %arg1: i32, %arg2: i32) -> (i32, i32, i32) {
    %c0_i32 = arith.constant 0 : i32
    %c0_i32_0 = arith.constant 0 : i32
    return %arg0, %c0_i32, %arg2 : i32, i32, i32
  }
  func.func @transform_3(%arg0: i32, %arg1: i32, %arg2: i32) -> (i32, i32) {
    %c0_i32 = arith.constant 0 : i32
    %c0_i32_0 = arith.constant 0 : i32
    %c0_i32_1 = arith.constant 0 : i32
    return %c0_i32, %c0_i32_0 : i32, i32
  }
  func.func @transform_4(%arg0: i32, %arg1: i32, %arg2: i32) -> (i32, i32) {
    %c0_i32 = arith.constant 0 : i32
    %c0_i32_0 = arith.constant 0 : i32
    %c0_i32_1 = arith.constant 0 : i32
    return %c0_i32, %c0_i32_0 : i32, i32
  }
  func.func @transform_5(%arg0: i32, %arg1: i32, %arg2: i32) -> (i32, i32) {
    %c0_i32 = arith.constant 0 : i32
    %c0_i32_0 = arith.constant 0 : i32
    return %c0_i32, %arg2 : i32, i32
  }
  func.func @transform_6(%arg0: i32, %arg1: i32, %arg2: i32) -> (i32, i32) {
    %c0_i32 = arith.constant 0 : i32
    %c0_i32_0 = arith.constant 0 : i32
    return %c0_i32, %arg2 : i32, i32
  }
  func.func @transform_7(%arg0: i32, %arg1: i32, %arg2: i32) -> (i32, i32) {
    %c0_i32 = arith.constant 0 : i32
    %c0_i32_0 = arith.constant 0 : i32
    return %c0_i32, %arg2 : i32, i32
  }
  func.func @transform_8(%arg0: i32, %arg1: i32, %arg2: i32) -> (i32, i32) {
    %c0_i32 = arith.constant 0 : i32
    %c0_i32_0 = arith.constant 0 : i32
    return %c0_i32, %arg2 : i32, i32
  }
  func.func @transform_9(%arg0: i32, %arg1: i32, %arg2: i32) -> (i32, i32) {
    %c0_i32 = arith.constant 0 : i32
    %c0_i32_0 = arith.constant 0 : i32
    return %arg2, %c0_i32 : i32, i32
  }
  func.func @transform_10(%arg0: i32, %arg1: i32, %arg2: i32) -> (i32, i32) {
    %c0_i32 = arith.constant 0 : i32
    %c0_i32_0 = arith.constant 0 : i32
    %c0_i32_1 = arith.constant 0 : i32
    return %c0_i32, %c0_i32_0 : i32, i32
  }
  func.func @transform_11(%arg0: i32, %arg1: i32, %arg2: i32) -> (i32, i32, i32) {
    %c0_i32 = arith.constant 0 : i32
    %c0_i32_0 = arith.constant 0 : i32
    return %arg0, %arg1, %c0_i32 : i32, i32, i32
  }
}

</mosaic_0001>

<bundles_post_ra>
// kernel: tpu_custom_call.1
= control target key start
LH: loop header
LB: loop body
LE: loop exit
PB: predicated region body
PF: predicated region fallthrough
CT: control target
= control target key end

     0   :  { %s1643_s0 = inlined_call_operand.vmem [shape: f32[2,8,32], index: 0, kind: input, shape index: {}]   ;;  %s1644_s1 = inlined_call_operand.vmem [shape: f32[2,1,128], index: 1, kind: input, shape index: {}]   ;;  %s1645_s2 = inlined_call_operand.vmem [shape: f32[2,1,128], index: 2, kind: input, shape index: {}]   ;;  %s1646_s3 = inlined_call_operand.vmem [shape: f32[1,32], index: 3, kind: input, shape index: {}]   ;;  %s1647_s4 = inlined_call_operand.vmem [shape: f32[1,32], index: 4, kind: input, shape index: {}]   ;;  %s1648_s5 = inlined_call_operand.vmem [shape: f32[32,128], index: 5, kind: input, shape index: {}]   ;;  %s1649_s6 = inlined_call_operand.vmem [shape: f32[1,128], index: 6, kind: input, shape index: {}]   ;;  %s1650_s7 = inlined_call_operand.vmem [shape: f32[32,128], index: 7, kind: input, shape index: {}]   ;;  %s1651_s8 = inlined_call_operand.vmem [shape: f32[1,128], index: 8, kind: input, shape index: {}]   ;;  %s1652_s9 = inlined_call_operand.vmem [shape: f32[128,32], index: 9, kind: input, shape index: {}]   ;;  %s1653_s10 = inlined_call_operand.vmem [shape: f32[1,32], index: 10, kind: input, shape index: {}]   ;;  %s1654_s11 = inlined_call_operand.hbm [shape: f32[2,8,32], index: 11, kind: output, shape index: {}]  }
   0x1   :  { %1655 = sst [smem:[#allocation7_spill]] %s1643_s0 }
   0x2   :  { %1656 = sst [smem:[#allocation8_spill]] %s1644_s1 }
   0x3   :  { %16 = vsyncpa [#allocation5], 0 }
   0x4   :  { %18 = vsyncpa [#allocation5 + $0x1], 0  ;;  %s1410_s17 = smov 0   ;;  %s1412_s18 = smov 0  }
   0x5   :  { %s1414_s19 = smov 0   ;;  %s1416_s20 = smov 0  }
   0x6   :  { %s1418_s21 = smov 0   ;;  %s1420_s22 = smov 0  }
   0x7 LB: > { %s1059_s23 = sadd.s32 4294967295, %s1344_s22   ;;  %s1060_s24 = sadd.s32 4294967294, %s1344_s22   ;;  %s1344_s22 = sphi %s1420_s22, %s24_s22   ;;  %s1340_s21 = sphi %s1418_s21, %s1665_s21   ;;  %s1336_s20 = sphi %s1416_s20, %s1664_s20   ;;  %s1332_s19 = sphi %s1414_s19, %s1663_s19   ;;  %s1328_s18 = sphi %s1412_s18, %s1662_s18   ;;  %s1324_s17 = sphi %s1410_s17, %s1661_s17  }
   0x8   : > { %s43_s25 = sadd.s32 1, %s1340_s21  ;;  %s329_s26 = sadd.s32 1, %s1332_s19 }
   0x9   : > { %p45_p0 = scmp.ge.s32.totalorder %s43_s25, 2  ;;  %p339_p1 = scmp.ne.s32.totalorder %s1332_s19, %s1328_s18 }
   0xa   : > { %p340_p2 = scmp.eq.s32.totalorder %s1059_s23, 1  ;;  %p345_p3 = scmp.ne.s32.totalorder %s1328_s18, %s1324_s17 }
   0xb   : > { %s1667_s25 = smov (%p45_p0, %s43_s25), 0  ;;  %p346_p5 = scmp.eq.s32.totalorder %s1060_s24, 1 }
   0xc   : > { %p1450_p4 = por %p340_p2, %p339_p1  ;;  %s324_s28 = ssub.s32 %s1340_s21, %s1667_s25 }
   0xd   : > { %p1068_p6 = scmp.ge.s32.totalorder %s1344_s22, 1  ;;  %p327_p7 = scmp.eq.s32.totalorder %s324_s28, 0 }
   0xe   : > { %p1457_p8 = por %p346_p5, %p345_p3  ;;  %p436_p9 = scmp.lt.s32.totalorder %s1344_s22, 3 }
   0xf   : > { %s1463_s30 = scalar_select %p327_p7, %s1332_s19, %s329_s26  }
  0x10   : > { %p437_p10 = pnand %p1068_p6, %p436_p9 }
  0x11   : > { %p509_p11 = scmp.lt.s32.totalorder (!%p437_p10), %s1336_s20, 1  ;;  %vm553_vm0 = vcmask (!%p437_p10), 261120   ;;  %s1659_s0 = sld [smem:[#allocation7_spill]] (!%p437_p10)  ;;  %v587_v7 = vld [vmem:[%s1648_s5] sm:$0xff] (!%p437_p10)  ;;  %v588_v8 = vld [vmem:[%s1648_s5 + $0x8] sm:$0xff] (!%p437_p10)  ;;  %v1346_v10 = vmov (!%p437_p10), 0.0|0.0  }
  0x12   : > { %440 = sbr.rel (%p437_p10) target bundleno = 834 (0x342), region = 64  ;;  %v1169_v9 = vpack.c.bf16 (!%p437_p10), %v588_v8, %v587_v7  ;;  %1168 = vmatprep.subr.bf16.mxu1 (!%p437_p10), %v1346_v10  ;;  %1180 = vmatprep.subr.bf16.mxu0 (!%p437_p10), %v1346_v10  ;;  %v589_v11 = vld [vmem:[%s1648_s5 + $0x10] sm:$0xff] (!%p437_p10)  ;;  %v590_v12 = vld [vmem:[%s1648_s5 + $0x18] sm:$0xff] (!%p437_p10)  ;;  %v1347_v14 = vmov (!%p437_p10), 0.0   ;;  %vm1348_vm1 = vmmov (!%p437_p10), 0   ;;  %v672_v24 = vld [vmem:[%s1650_s7] sm:$0xff] (!%p437_p10) }
  0x13   : > { %v1172_v13 = vpack.c.bf16 (!%p437_p10), %v590_v12, %v589_v11  ;;  %585 = vst.msk [vmem:[#allocation3] sm:$0xff] (!%p437_p10), %vm553_vm0, %v1347_v14  ;;  %1119 = vmatprep.mubr.msk.f32.mxu1 (!%p437_p10), %vm1348_vm1, %v1347_v14  ;;  %1165 = vmatprep.mubr.msk.f32.mxu0 (!%p437_p10), %vm1348_vm1, %v1347_v14  ;;  %v1071_v19 = vld [vmem:[%s1646_s3] ss:$0 sm:$0xff] (!%p437_p10)  ;;  %v673_v25 = vld [vmem:[%s1650_s7 + $0x8] sm:$0xff] (!%p437_p10)  ;;  %v674_v27 = vld [vmem:[%s1650_s7 + $0x10] sm:$0xff] (!%p437_p10)  ;;  %s1660_s1 = sld [smem:[#allocation8_spill]] (!%p437_p10) }
  0x14   : > { %1170 = vmatpush3.bf16.msra.mxu1 (!%p437_p10), %v1169_v9  ;;  %v1072_v21 = vld [vmem:[%s1647_s4] ss:$0 sm:$0xff] (!%p437_p10)  ;;  %v1175_v26 = vpack.c.bf16 (!%p437_p10), %v673_v25, %v672_v24  ;;  %v675_v28 = vld [vmem:[%s1650_s7 + $0x18] sm:$0xff] (!%p437_p10)  ;;  %v777_v32 = vld [vmem:[%s1652_s9 + $0x8] sm:$0xff] (!%p437_p10)  ;;  %s506_s23 = sand.u32 (!%p437_p10), 1, %s1328_s18  }
  0x15   : > { %1171 = vmatprep.subr.bf16.mxu1 (!%p437_p10), %v1346_v10  ;;  %v1178_v30 = vpack.c.bf16 (!%p437_p10), %v675_v28, %v674_v27  ;;  %v776_v31 = vld [vmem:[%s1652_s9] sm:$0xff] (!%p437_p10)  ;;  %v778_v34 = vld [vmem:[%s1652_s9 + $0x10] sm:$0xff] (!%p437_p10)  ;;  %v779_v35 = vld [vmem:[%s1652_s9 + $0x18] sm:$0xff] (!%p437_p10)  ;;  %s1069_s24 = sshll.u32 (!%p437_p10), %s506_s23, 3 }
  0x16   : > { %v1181_v33 = vpack.c.bf16 (!%p437_p10), %v777_v32, %v776_v31  ;;  %v1184_v36 = vpack.c.bf16 (!%p437_p10), %v779_v35, %v778_v34  ;;  %v780_v37 = vld [vmem:[%s1652_s9 + $0x20] sm:$0xff] (!%p437_p10)  ;;  %v781_v38 = vld [vmem:[%s1652_s9 + $0x28] sm:$0xff] (!%p437_p10)  ;;  %v782_v40 = vld [vmem:[%s1652_s9 + $0x30] sm:$0xff] (!%p437_p10) }
  0x17   : > { %v1187_v39 = vpack.c.bf16 (!%p437_p10), %v781_v38, %v780_v37  ;;  %v783_v41 = vld [vmem:[%s1652_s9 + $0x38] sm:$0xff] (!%p437_p10)  ;;  %v784_v43 = vld [vmem:[%s1652_s9 + $0x40] sm:$0xff] (!%p437_p10)  ;;  %v785_v44 = vld [vmem:[%s1652_s9 + $0x48] sm:$0xff] (!%p437_p10) }
  0x18   : > { %1173 = vmatpush3.bf16.msra.mxu1 (!%p437_p10), %v1172_v13  ;;  %1182 = vmatpush3.bf16.msra.mxu0 (!%p437_p10), %v1181_v33  ;;  %v1190_v42 = vpack.c.bf16 (!%p437_p10), %v783_v41, %v782_v40  ;;  %v1193_v45 = vpack.c.bf16 (!%p437_p10), %v785_v44, %v784_v43  ;;  %v786_v46 = vld [vmem:[%s1652_s9 + $0x50] sm:$0xff] (!%p437_p10)  ;;  %v787_v47 = vld [vmem:[%s1652_s9 + $0x58] sm:$0xff] (!%p437_p10)  ;;  %v788_v49 = vld [vmem:[%s1652_s9 + $0x60] sm:$0xff] (!%p437_p10) }
  0x19   : > { %s1467_s12 = scalar_select %p509_p11, %s1336_s20, 1  ;;  %1174 = vmatprep.subr.bf16.mxu1 %v1346_v10  ;;  %1183 = vmatprep.subr.bf16.mxu0 %v1346_v10  ;;  %v1196_v48 = vpack.c.bf16 %v787_v47, %v786_v46  ;;  %v789_v50 = vld [vmem:[%s1652_s9 + $0x68] sm:$0xff]  ;;  %v790_v52 = vld [vmem:[%s1652_s9 + $0x70] sm:$0xff]  ;;  %v791_v53 = vld [vmem:[%s1652_s9 + $0x78] sm:$0xff] }
  0x1a   : > { %v1199_v51 = vpack.c.bf16 %v789_v50, %v788_v49  ;;  %v1202_v54 = vpack.c.bf16 %v791_v53, %v790_v52  ;;  %v1075_v57 = vld [vmem:[%s1651_s8] ss:$0 sm:$0xff]  ;;  %v775_v9 = vld [vmem:[#allocation3] sm:$0xff] }
  0x1b   : > { %s1070_s13 = sshll.u32 %s1467_s12, 3  ;;  %v1073_v63 = vld [vmem:[%s1649_s6] ss:$0 sm:$0xff]  ;;  %s527_s14 = scalar_lea.vmem %s1645_s2, %s1467_s12 }
  0x1c   : > { %s515_s16 = scalar_lea.vmem %s1659_s0, %s1070_s13  ;;  %1185 = vmatpush3.bf16.msra.mxu0 %v1184_v36  ;;  %v1079_v13 = vld [vmem:[%s1653_s10] ss:$0 sm:$0xff]  ;;  %s508_s13 = scalar_lea.vmem [#allocation4], %s1069_s24 }
  0x1d   : > { %v552_v0 = vld [vmem:[%s515_s16] sm:$0xff]  ;;  %1186 = vmatprep.subr.bf16.mxu0 %v1346_v10  ;;  %s521_s16 = scalar_lea.vmem %s1660_s1, %s1467_s12  ;;  %s1081_s12 = sshll.u32 %s1336_s20, 7 }
  0x1e   : > { %v554_v1 = vsel %vm553_vm0, %v552_v0, 0.0  ;;  %s878_s1 = scalar_lea.sflag [#allocation5], %s506_s23  ;;  %s1349_s20 = smov [#allocation4]  }
  0x1f   : > { %555 = vadd.xlane.f32.xlu0 %v554_v1  ;;  %s1270_s24 = sshll.u32 %s1349_s20, 4  ;;  %s1271_s24 = int_to_ptr.vmem [resolvable:$false] %s1270_s24 }
  0x20   : > { %1188 = vmatpush3.bf16.msra.mxu0 %v1187_v39  ;;  %s1272_s28 = scalar_lea.vmem %s1271_s24, 256 }
  0x21   : > { %1189 = vmatprep.subr.bf16.mxu0 %v1346_v10 }
  0x24   : > { %1191 = vmatpush3.bf16.msra.mxu0 %v1190_v42 }
  0x25   : > { %1192 = vmatprep.subr.bf16.mxu0 %v1346_v10 }
  0x28   : > { %1194 = vmatpush3.bf16.msra.mxu0 %v1193_v45 }
  0x29   : > { %1195 = vmatprep.subr.bf16.mxu0 %v1346_v10 }
  0x2c   : > { %1197 = vmatpush3.bf16.msra.mxu0 %v1196_v48 }
  0x2d   : > { %1198 = vmatprep.subr.bf16.mxu0 %v1346_v10 }
  0x30   : > { %1200 = vmatpush3.bf16.msra.mxu0 %v1199_v51 }
  0x31   : > { %1201 = vmatprep.subr.bf16.mxu0 %v1346_v10 }
  0x34   : > { %1203 = vmatpush3.bf16.msra.mxu0 %v1202_v54 }
  0xac   : > { %v556_v2 = vpop.xlane.xlu0 %555 }
  0xad   : > { %v558_v3 = vmul.f32 0.03125, %v556_v2 }
  0xaf   : > { %v559_v4 = vsub.f32 %v552_v0, %v558_v3 }
  0xb1   : > { %v560_v5 = vmul.f32 %v559_v4, %v559_v4 }
  0xb3   : > { %v561_v6 = vsel %vm553_vm0, %v560_v5, 0.0 }
  0xb4   : > { %562 = vadd.xlane.f32.xlu0 %v561_v6  ;;  %v1078_v6 = vld [vmem:[%s521_s16] ss:$0 sm:$0xff]  ;;  %s1595_s16 = scalar_lea.hbm %s1654_s11, %s1081_s12 }
 0x141   : > { %v563_v15 = vpop.xlane.xlu0 %562 }
 0x142   : > { %v564_v16 = vmul.f32 0.03125, %v563_v15 }
 0x144   : > { %v565_v17 = vadd.f32 1e-05, %v564_v16 }
 0x146   : > { %1262 = vrsqrt.f32 %v565_v17 }
 0x150   : > { %v1263_v18 = vpop.eup %1262 }
 0x151   : > { %v567_v20 = vmul.f32 %v1263_v18, %v559_v4  ;;  %v1077_v4 = vld [vmem:[%s527_s14] ss:$0 sm:$0xff]  ;;  %s892_s14 = sshll.u32 %s508_s13, 4  ;;  %s1597_s14 = int_to_ptr.vmem [resolvable:$true] %s892_s14 }
 0x152   : > { %s1266_s26 = scalar_lea.vmem %s1597_s14, 128  ;;  %p1273_p1 = scmp.lt.s32.totalorder %s1597_s14, %s1271_s24 }
 0x153   : > { %v575_v22 = vmul.f32 %v1071_v19, %v567_v20  ;;  %p1267_p12 = scmp.ne.s32.totalorder %s1597_s14, %s1266_s26  ;;  %p1274_p2 = scmp.lt.s32.totalorder %s1272_s28, %s1266_s26 }
 0x155   : > { %v583_v23 = vadd.f32 %v1072_v21, %v575_v22  ;;  %p1268_p13 = pnand %p1267_p12, %p1450_p4  ;;  %p1275_p3 = por %p1274_p2, %p1273_p1 }
 0x157   : > { %584 = vst.msk [vmem:[#allocation2] sm:$0xff] %vm553_vm0, %v583_v23  ;;  %p1269_p0 = pneg %p1268_p13 }
 0x159   : > { %p1276_p5 = pnand %p1275_p3, %p1269_p0 }
 0x15e   : > { %v586_v29 = vld [vmem:[#allocation2] sm:$0xff] }
 0x15f   : > { %1120 = vmatmul.mubr.msk.f32.vlgmr.msra.gmra.mrb[0].mxu1 %vm553_vm0, %v586_v29 }
 0x160   : > { %1176 = vmatpush3.bf16.msra.mxu1 %v1175_v26  ;;  %1130 = vmatprep.mubr.msk.f32.mxu1 %vm1348_vm1, %v1347_v14 }
 0x161   : > { %1177 = vmatprep.subr.bf16.mxu1 %v1346_v10 }
 0x164   : > { %1179 = vmatpush3.bf16.msra.mxu1 %v1178_v30 }
 0x167   : > { %1131 = vmatmul.mubr.msk.f32.vlgmr.msra.gmra.mrb[2].mxu1 %vm553_vm0, %v586_v29 }
 0x232   : > { %v668_v55 = vpop.f32.mrb[0].mxu1 }
 0x233   : > { %v1121_v56 = vpop.f32.mrb[1].mxu1  ;;  %v669_v2 = vadd.f32 %v1073_v63, %v668_v55 }
 0x23a   : > { %v749_v58 = vpop.f32.mrb[2].mxu1 }
 0x23b   : > { %v750_v59 = vadd.f32 %v1075_v57, %v749_v58  ;;  %v1132_v60 = vpop.f32.mrb[3].mxu1 }
 0x23d   : > { %v754_v61 = vmul.f32 0.70710677, %v750_v59  ;;  %v753_v0 = vmul.f32 0.5, %v750_v59 }
 0x23f   : > { %1264 = verf.f32 %v754_v61 }
 0x249   : > { %v1265_v62 = vpop.eup %1264 }
 0x24a   : > { %v756_v1 = vadd.f32 1.0, %v1265_v62 }
 0x24c   : > { %v757_v3 = vmul.f32 %v756_v1, %v753_v0 }
 0x24e   : > { %v758_v5 = vmul.f32 %v757_v3, %v669_v2 }
 0x250   : > { %v767_v7 = vmul.f32 %v1077_v4, %v758_v5 }
 0x252   : > { %v774_v8 = vadd.f32 %v1078_v6, %v767_v7 }
 0x254   : > { %1166 = vmatmul.mubr.f32.vlgmr.msra.gmra.mrb[0].mxu0 %v774_v8 }
 0x327   : > { %v858_v10 = vpop.f32.mrb[0].mxu0 }
 0x328   : > { %v862_v11 = vadd.f32 %v858_v10, %v775_v9  ;;  %v1167_v12 = vpop.f32.mrb[1].mxu0 }
 0x32a   : > { %863 = vst.msk [vmem:[#allocation3] sm:$0xff] %vm553_vm0, %v862_v11 }
 0x331   : > { %v867_v14 = vld [vmem:[#allocation3] sm:$0xff] }
 0x332   : > { %v875_v15 = vadd.f32 %v1079_v13, %v867_v14 }
 0x334   : > { %876 = vst.msk [vmem:[%s508_s13] sm:$0xff] %vm553_vm0, %v875_v15 }
 0x335   : > { %1279 = shalt.err (!%p1276_p5)
}
 0x336   : > { %s1280_s23 = scalar_lea.hbm %s1595_s16, 128  ;;  %s1284_s15 = scalar_lea.hbm %s1654_s11, 256 }
 0x337   : > { %p1281_p6 = scmp.ne.s32.totalorder %s1595_s16, %s1280_s23  ;;  %p1285_p10 = scmp.lt.u32.totalorder %s1595_s16, %s1654_s11 }
 0x338   : > { %p1286_p11 = scmp.lt.u32.totalorder %s1284_s15, %s1280_s23  ;;  %p1288_p13 = scmp.lt.u32.totalorder %s1280_s23, %s1595_s16 }
 0x339   : > { %p1282_p7 = pnand %p1281_p6, %p1450_p4 }
 0x33a   : > { %p1287_p12 = por %p1286_p11, %p1285_p10 }
 0x33b   : > { %p1283_p9 = pneg %p1282_p7 }
 0x33c   : > { %p1289_p0 = por %p1288_p13, %p1287_p12 }
 0x33e   : > { %p1290_p1 = pnand %p1289_p0, %p1283_p9 }
 0x340   : > { %1293 = shalt.err (!%p1290_p1)
}
 0x341   : > { %1204 = dma.vmem_to_hbm [thread:$0]  (%p1450_p4), %s1597_s14, 128, %s1595_s16, %s878_s1  }
 0x342 PF: > { %p1210_p2 = scmp.ge.s32.totalorder %s1344_s22, 2  ;;  %s904_s26 = sand.u32 1, %s1324_s17  }
 0x343   : > { %s905_s24 = scalar_lea.sflag [#allocation5], %s904_s26 }
 0x344   : > { %p1207_p3 = pnand %p1210_p2, %p1457_p8 }
 0x346   : > { %1319 = dma.done.wait (!%p1207_p3), %s905_s24, 128  }
 0x347   : > { %1321 = vsyncadd (!%p1207_p3), %s905_s24, 4294967168  ;;  %s24_s22 = sadd.s32 1, %s1344_s22   ;;  %s1661_s17 = smov %s1328_s18 }
 0x348   : > { %p21_p5 = scmp.ge.s32.totalorder %s24_s22, 4   ;;  %s1662_s18 = smov %s1332_s19 }
 0x349   : > { %s1663_s19 = smov %s1463_s30  ;;  %s1664_s20 = smov %s1340_s21 }
 0x34a   : > { %s1665_s21 = smov %s1667_s25  ;;  %23 = sbr.rel (!%p21_p5) target bundleno = 7 (0x7), region = 128 }
 0x351   :  { %910 = vsyncpa [#allocation5], 1 }
 0x352   :  { %912 = vsyncpa [#allocation5 + $0x1], 1 }

// kernel: tpu_custom_call.1
= control target key start
LH: loop header
LB: loop body
LE: loop exit
PB: predicated region body
PF: predicated region fallthrough
CT: control target
= control target key end

     0   :  { %s1643_s0 = inlined_call_operand.vmem [shape: f32[2,8,32], index: 0, kind: input, shape index: {}]   ;;  %s1644_s1 = inlined_call_operand.vmem [shape: f32[2,1,128], index: 1, kind: input, shape index: {}]   ;;  %s1645_s2 = inlined_call_operand.vmem [shape: f32[2,1,128], index: 2, kind: input, shape index: {}]   ;;  %s1646_s3 = inlined_call_operand.vmem [shape: f32[1,32], index: 3, kind: input, shape index: {}]   ;;  %s1647_s4 = inlined_call_operand.vmem [shape: f32[1,32], index: 4, kind: input, shape index: {}]   ;;  %s1648_s5 = inlined_call_operand.vmem [shape: f32[32,128], index: 5, kind: input, shape index: {}]   ;;  %s1649_s6 = inlined_call_operand.vmem [shape: f32[1,128], index: 6, kind: input, shape index: {}]   ;;  %s1650_s7 = inlined_call_operand.vmem [shape: f32[32,128], index: 7, kind: input, shape index: {}]   ;;  %s1651_s8 = inlined_call_operand.vmem [shape: f32[1,128], index: 8, kind: input, shape index: {}]   ;;  %s1652_s9 = inlined_call_operand.vmem [shape: f32[128,32], index: 9, kind: input, shape index: {}]   ;;  %s1653_s10 = inlined_call_operand.vmem [shape: f32[1,32], index: 10, kind: input, shape index: {}]   ;;  %s1654_s11 = inlined_call_operand.hbm [shape: f32[2,8,32], index: 11, kind: output, shape index: {}]  }
   0x1   :  { %1655 = sst [smem:[#allocation7_spill]] %s1643_s0 }
   0x2   :  { %1656 = sst [smem:[#allocation8_spill]] %s1644_s1 }
   0x3   :  { %16 = vsyncpa [#allocation5], 0 }
   0x4   :  { %18 = vsyncpa [#allocation5 + $0x1], 0  ;;  %s1410_s17 = smov 0   ;;  %s1412_s18 = smov 0  }
   0x5   :  { %s1414_s19 = smov 0   ;;  %s1416_s20 = smov 0  }
   0x6   :  { %s1418_s21 = smov 0   ;;  %s1420_s22 = smov 0  }
   0x7 LB: > { %s1059_s23 = sadd.s32 4294967295, %s1344_s22   ;;  %s1060_s24 = sadd.s32 4294967294, %s1344_s22   ;;  %s1344_s22 = sphi %s1420_s22, %s24_s22   ;;  %s1340_s21 = sphi %s1418_s21, %s1665_s21   ;;  %s1336_s20 = sphi %s1416_s20, %s1664_s20   ;;  %s1332_s19 = sphi %s1414_s19, %s1663_s19   ;;  %s1328_s18 = sphi %s1412_s18, %s1662_s18   ;;  %s1324_s17 = sphi %s1410_s17, %s1661_s17  }
   0x8   : > { %s43_s25 = sadd.s32 1, %s1340_s21  ;;  %s329_s26 = sadd.s32 1, %s1332_s19 }
   0x9   : > { %p45_p0 = scmp.ge.s32.totalorder %s43_s25, 2  ;;  %p339_p1 = scmp.ne.s32.totalorder %s1332_s19, %s1328_s18 }
   0xa   : > { %p340_p2 = scmp.eq.s32.totalorder %s1059_s23, 1  ;;  %p345_p3 = scmp.ne.s32.totalorder %s1328_s18, %s1324_s17 }
   0xb   : > { %s1667_s25 = smov (%p45_p0, %s43_s25), 0  ;;  %p346_p5 = scmp.eq.s32.totalorder %s1060_s24, 1 }
   0xc   : > { %p1450_p4 = por %p340_p2, %p339_p1  ;;  %s324_s28 = ssub.s32 %s1340_s21, %s1667_s25 }
   0xd   : > { %p1068_p6 = scmp.ge.s32.totalorder %s1344_s22, 1  ;;  %p327_p7 = scmp.eq.s32.totalorder %s324_s28, 0 }
   0xe   : > { %p1457_p8 = por %p346_p5, %p345_p3  ;;  %p436_p9 = scmp.lt.s32.totalorder %s1344_s22, 3 }
   0xf   : > { %s1463_s30 = scalar_select %p327_p7, %s1332_s19, %s329_s26  }
  0x10   : > { %p437_p10 = pnand %p1068_p6, %p436_p9 }
  0x11   : > { %p509_p11 = scmp.lt.s32.totalorder (!%p437_p10), %s1336_s20, 1  ;;  %vm553_vm0 = vcmask (!%p437_p10), 261120   ;;  %s1659_s0 = sld [smem:[#allocation7_spill]] (!%p437_p10)  ;;  %v587_v7 = vld [vmem:[%s1648_s5] sm:$0xff] (!%p437_p10)  ;;  %v588_v8 = vld [vmem:[%s1648_s5 + $0x8] sm:$0xff] (!%p437_p10)  ;;  %v1346_v10 = vmov (!%p437_p10), 0.0|0.0  }
  0x12   : > { %440 = sbr.rel (%p437_p10) target bundleno = 834 (0x342), region = 64  ;;  %v1169_v9 = vpack.c.bf16 (!%p437_p10), %v588_v8, %v587_v7  ;;  %1168 = vmatprep.subr.bf16.mxu1 (!%p437_p10), %v1346_v10  ;;  %1180 = vmatprep.subr.bf16.mxu0 (!%p437_p10), %v1346_v10  ;;  %v589_v11 = vld [vmem:[%s1648_s5 + $0x10] sm:$0xff] (!%p437_p10)  ;;  %v590_v12 = vld [vmem:[%s1648_s5 + $0x18] sm:$0xff] (!%p437_p10)  ;;  %v1347_v14 = vmov (!%p437_p10), 0.0   ;;  %vm1348_vm1 = vmmov (!%p437_p10), 0   ;;  %v672_v24 = vld [vmem:[%s1650_s7] sm:$0xff] (!%p437_p10) }
  0x13   : > { %v1172_v13 = vpack.c.bf16 (!%p437_p10), %v590_v12, %v589_v11  ;;  %585 = vst.msk [vmem:[#allocation3] sm:$0xff] (!%p437_p10), %vm553_vm0, %v1347_v14  ;;  %1119 = vmatprep.mubr.msk.f32.mxu1 (!%p437_p10), %vm1348_vm1, %v1347_v14  ;;  %1165 = vmatprep.mubr.msk.f32.mxu0 (!%p437_p10), %vm1348_vm1, %v1347_v14  ;;  %v1071_v19 = vld [vmem:[%s1646_s3] ss:$0 sm:$0xff] (!%p437_p10)  ;;  %v673_v25 = vld [vmem:[%s1650_s7 + $0x8] sm:$0xff] (!%p437_p10)  ;;  %v674_v27 = vld [vmem:[%s1650_s7 + $0x10] sm:$0xff] (!%p437_p10)  ;;  %s1660_s1 = sld [smem:[#allocation8_spill]] (!%p437_p10) }
  0x14   : > { %1170 = vmatpush3.bf16.msra.mxu1 (!%p437_p10), %v1169_v9  ;;  %v1072_v21 = vld [vmem:[%s1647_s4] ss:$0 sm:$0xff] (!%p437_p10)  ;;  %v1175_v26 = vpack.c.bf16 (!%p437_p10), %v673_v25, %v672_v24  ;;  %v675_v28 = vld [vmem:[%s1650_s7 + $0x18] sm:$0xff] (!%p437_p10)  ;;  %v777_v32 = vld [vmem:[%s1652_s9 + $0x8] sm:$0xff] (!%p437_p10)  ;;  %s506_s23 = sand.u32 (!%p437_p10), 1, %s1328_s18  }
  0x15   : > { %1171 = vmatprep.subr.bf16.mxu1 (!%p437_p10), %v1346_v10  ;;  %v1178_v30 = vpack.c.bf16 (!%p437_p10), %v675_v28, %v674_v27  ;;  %v776_v31 = vld [vmem:[%s1652_s9] sm:$0xff] (!%p437_p10)  ;;  %v778_v34 = vld [vmem:[%s1652_s9 + $0x10] sm:$0xff] (!%p437_p10)  ;;  %v779_v35 = vld [vmem:[%s1652_s9 + $0x18] sm:$0xff] (!%p437_p10)  ;;  %s1069_s24 = sshll.u32 (!%p437_p10), %s506_s23, 3 }
  0x16   : > { %v1181_v33 = vpack.c.bf16 (!%p437_p10), %v777_v32, %v776_v31  ;;  %v1184_v36 = vpack.c.bf16 (!%p437_p10), %v779_v35, %v778_v34  ;;  %v780_v37 = vld [vmem:[%s1652_s9 + $0x20] sm:$0xff] (!%p437_p10)  ;;  %v781_v38 = vld [vmem:[%s1652_s9 + $0x28] sm:$0xff] (!%p437_p10)  ;;  %v782_v40 = vld [vmem:[%s1652_s9 + $0x30] sm:$0xff] (!%p437_p10) }
  0x17   : > { %v1187_v39 = vpack.c.bf16 (!%p437_p10), %v781_v38, %v780_v37  ;;  %v783_v41 = vld [vmem:[%s1652_s9 + $0x38] sm:$0xff] (!%p437_p10)  ;;  %v784_v43 = vld [vmem:[%s1652_s9 + $0x40] sm:$0xff] (!%p437_p10)  ;;  %v785_v44 = vld [vmem:[%s1652_s9 + $0x48] sm:$0xff] (!%p437_p10) }
  0x18   : > { %1173 = vmatpush3.bf16.msra.mxu1 (!%p437_p10), %v1172_v13  ;;  %1182 = vmatpush3.bf16.msra.mxu0 (!%p437_p10), %v1181_v33  ;;  %v1190_v42 = vpack.c.bf16 (!%p437_p10), %v783_v41, %v782_v40  ;;  %v1193_v45 = vpack.c.bf16 (!%p437_p10), %v785_v44, %v784_v43  ;;  %v786_v46 = vld [vmem:[%s1652_s9 + $0x50] sm:$0xff] (!%p437_p10)  ;;  %v787_v47 = vld [vmem:[%s1652_s9 + $0x58] sm:$0xff] (!%p437_p10)  ;;  %v788_v49 = vld [vmem:[%s1652_s9 + $0x60] sm:$0xff] (!%p437_p10) }
  0x19   : > { %s1467_s12 = scalar_select %p509_p11, %s1336_s20, 1  ;;  %1174 = vmatprep.subr.bf16.mxu1 %v1346_v10  ;;  %1183 = vmatprep.subr.bf16.mxu0 %v1346_v10  ;;  %v1196_v48 = vpack.c.bf16 %v787_v47, %v786_v46  ;;  %v789_v50 = vld [vmem:[%s1652_s9 + $0x68] sm:$0xff]  ;;  %v790_v52 = vld [vmem:[%s1652_s9 + $0x70] sm:$0xff]  ;;  %v791_v53 = vld [vmem:[%s1652_s9 + $0x78] sm:$0xff] }
  0x1a   : > { %v1199_v51 = vpack.c.bf16 %v789_v50, %v788_v49  ;;  %v1202_v54 = vpack.c.bf16 %v791_v53, %v790_v52  ;;  %v1075_v57 = vld [vmem:[%s1651_s8] ss:$0 sm:$0xff]  ;;  %v775_v9 = vld [vmem:[#allocation3] sm:$0xff] }
  0x1b   : > { %s1070_s13 = sshll.u32 %s1467_s12, 3  ;;  %v1073_v63 = vld [vmem:[%s1649_s6] ss:$0 sm:$0xff]  ;;  %s527_s14 = scalar_lea.vmem %s1645_s2, %s1467_s12 }
  0x1c   : > { %s515_s16 = scalar_lea.vmem %s1659_s0, %s1070_s13  ;;  %1185 = vmatpush3.bf16.msra.mxu0 %v1184_v36  ;;  %v1079_v13 = vld [vmem:[%s1653_s10] ss:$0 sm:$0xff]  ;;  %s508_s13 = scalar_lea.vmem [#allocation4], %s1069_s24 }
  0x1d   : > { %v552_v0 = vld [vmem:[%s515_s16] sm:$0xff]  ;;  %1186 = vmatprep.subr.bf16.mxu0 %v1346_v10  ;;  %s521_s16 = scalar_lea.vmem %s1660_s1, %s1467_s12  ;;  %s1081_s12 = sshll.u32 %s1336_s20, 7 }
  0x1e   : > { %v554_v1 = vsel %vm553_vm0, %v552_v0, 0.0  ;;  %s878_s1 = scalar_lea.sflag [#allocation5], %s506_s23  ;;  %s1349_s20 = smov [#allocation4]  }
  0x1f   : > { %555 = vadd.xlane.f32.xlu0 %v554_v1  ;;  %s1270_s24 = sshll.u32 %s1349_s20, 4  ;;  %s1271_s24 = int_to_ptr.vmem [resolvable:$false] %s1270_s24 }
  0x20   : > { %1188 = vmatpush3.bf16.msra.mxu0 %v1187_v39  ;;  %s1272_s28 = scalar_lea.vmem %s1271_s24, 256 }
  0x21   : > { %1189 = vmatprep.subr.bf16.mxu0 %v1346_v10 }
  0x24   : > { %1191 = vmatpush3.bf16.msra.mxu0 %v1190_v42 }
  0x25   : > { %1192 = vmatprep.subr.bf16.mxu0 %v1346_v10 }
  0x28   : > { %1194 = vmatpush3.bf16.msra.mxu0 %v1193_v45 }
  0x29   : > { %1195 = vmatprep.subr.bf16.mxu0 %v1346_v10 }
  0x2c   : > { %1197 = vmatpush3.bf16.msra.mxu0 %v1196_v48 }
  0x2d   : > { %1198 = vmatprep.subr.bf16.mxu0 %v1346_v10 }
  0x30   : > { %1200 = vmatpush3.bf16.msra.mxu0 %v1199_v51 }
  0x31   : > { %1201 = vmatprep.subr.bf16.mxu0 %v1346_v10 }
  0x34   : > { %1203 = vmatpush3.bf16.msra.mxu0 %v1202_v54 }
  0xac   : > { %v556_v2 = vpop.xlane.xlu0 %555 }
  0xad   : > { %v558_v3 = vmul.f32 0.03125, %v556_v2 }
  0xaf   : > { %v559_v4 = vsub.f32 %v552_v0, %v558_v3 }
  0xb1   : > { %v560_v5 = vmul.f32 %v559_v4, %v559_v4 }
  0xb3   : > { %v561_v6 = vsel %vm553_vm0, %v560_v5, 0.0 }
  0xb4   : > { %562 = vadd.xlane.f32.xlu0 %v561_v6  ;;  %v1078_v6 = vld [vmem:[%s521_s16] ss:$0 sm:$0xff]  ;;  %s1595_s16 = scalar_lea.hbm %s1654_s11, %s1081_s12 }
 0x141   : > { %v563_v15 = vpop.xlane.xlu0 %562 }
 0x142   : > { %v564_v16 = vmul.f32 0.03125, %v563_v15 }
 0x144   : > { %v565_v17 = vadd.f32 1e-05, %v564_v16 }
 0x146   : > { %1262 = vrsqrt.f32 %v565_v17 }
 0x150   : > { %v1263_v18 = vpop.eup %1262 }
 0x151   : > { %v567_v20 = vmul.f32 %v1263_v18, %v559_v4  ;;  %v1077_v4 = vld [vmem:[%s527_s14] ss:$0 sm:$0xff]  ;;  %s892_s14 = sshll.u32 %s508_s13, 4  ;;  %s1597_s14 = int_to_ptr.vmem [resolvable:$true] %s892_s14 }
 0x152   : > { %s1266_s26 = scalar_lea.vmem %s1597_s14, 128  ;;  %p1273_p1 = scmp.lt.s32.totalorder %s1597_s14, %s1271_s24 }
 0x153   : > { %v575_v22 = vmul.f32 %v1071_v19, %v567_v20  ;;  %p1267_p12 = scmp.ne.s32.totalorder %s1597_s14, %s1266_s26  ;;  %p1274_p2 = scmp.lt.s32.totalorder %s1272_s28, %s1266_s26 }
 0x155   : > { %v583_v23 = vadd.f32 %v1072_v21, %v575_v22  ;;  %p1268_p13 = pnand %p1267_p12, %p1450_p4  ;;  %p1275_p3 = por %p1274_p2, %p1273_p1 }
 0x157   : > { %584 = vst.msk [vmem:[#allocation2] sm:$0xff] %vm553_vm0, %v583_v23  ;;  %p1269_p0 = pneg %p1268_p13 }
 0x159   : > { %p1276_p5 = pnand %p1275_p3, %p1269_p0 }
 0x15e   : > { %v586_v29 = vld [vmem:[#allocation2] sm:$0xff] }
 0x15f   : > { %1120 = vmatmul.mubr.msk.f32.vlgmr.msra.gmra.mrb[0].mxu1 %vm553_vm0, %v586_v29 }
 0x160   : > { %1176 = vmatpush3.bf16.msra.mxu1 %v1175_v26  ;;  %1130 = vmatprep.mubr.msk.f32.mxu1 %vm1348_vm1, %v1347_v14 }
 0x161   : > { %1177 = vmatprep.subr.bf16.mxu1 %v1346_v10 }
 0x164   : > { %1179 = vmatpush3.bf16.msra.mxu1 %v1178_v30 }
 0x167   : > { %1131 = vmatmul.mubr.msk.f32.vlgmr.msra.gmra.mrb[2].mxu1 %vm553_vm0, %v586_v29 }
 0x232   : > { %v668_v55 = vpop.f32.mrb[0].mxu1 }
 0x233   : > { %v1121_v56 = vpop.f32.mrb[1].mxu1  ;;  %v669_v2 = vadd.f32 %v1073_v63, %v668_v55 }
 0x23a   : > { %v749_v58 = vpop.f32.mrb[2].mxu1 }
 0x23b   : > { %v750_v59 = vadd.f32 %v1075_v57, %v749_v58  ;;  %v1132_v60 = vpop.f32.mrb[3].mxu1 }
 0x23d   : > { %v754_v61 = vmul.f32 0.70710677, %v750_v59  ;;  %v753_v0 = vmul.f32 0.5, %v750_v59 }
 0x23f   : > { %1264 = verf.f32 %v754_v61 }
 0x249   : > { %v1265_v62 = vpop.eup %1264 }
 0x24a   : > { %v756_v1 = vadd.f32 1.0, %v1265_v62 }
 0x24c   : > { %v757_v3 = vmul.f32 %v756_v1, %v753_v0 }
 0x24e   : > { %v758_v5 = vmul.f32 %v757_v3, %v669_v2 }
 0x250   : > { %v767_v7 = vmul.f32 %v1077_v4, %v758_v5 }
 0x252   : > { %v774_v8 = vadd.f32 %v1078_v6, %v767_v7 }
 0x254   : > { %1166 = vmatmul.mubr.f32.vlgmr.msra.gmra.mrb[0].mxu0 %v774_v8 }
 0x327   : > { %v858_v10 = vpop.f32.mrb[0].mxu0 }
 0x328   : > { %v862_v11 = vadd.f32 %v858_v10, %v775_v9  ;;  %v1167_v12 = vpop.f32.mrb[1].mxu0 }
 0x32a   : > { %863 = vst.msk [vmem:[#allocation3] sm:$0xff] %vm553_vm0, %v862_v11 }
 0x331   : > { %v867_v14 = vld [vmem:[#allocation3] sm:$0xff] }
 0x332   : > { %v875_v15 = vadd.f32 %v1079_v13, %v867_v14 }
 0x334   : > { %876 = vst.msk [vmem:[%s508_s13] sm:$0xff] %vm553_vm0, %v875_v15 }
 0x335   : > { %1279 = shalt.err (!%p1276_p5)
}
 0x336   : > { %s1280_s23 = scalar_lea.hbm %s1595_s16, 128  ;;  %s1284_s15 = scalar_lea.hbm %s1654_s11, 256 }
 0x337   : > { %p1281_p6 = scmp.ne.s32.totalorder %s1595_s16, %s1280_s23  ;;  %p1285_p10 = scmp.lt.u32.totalorder %s1595_s16, %s1654_s11 }
 0x338   : > { %p1286_p11 = scmp.lt.u32.totalorder %s1284_s15, %s1280_s23  ;;  %p1288_p13 = scmp.lt.u32.totalorder %s1280_s23, %s1595_s16 }
 0x339   : > { %p1282_p7 = pnand %p1281_p6, %p1450_p4 }
 0x33a   : > { %p1287_p12 = por %p1286_p11, %p1285_p10 }
 0x33b   : > { %p1283_p9 = pneg %p1282_p7 }
 0x33c   : > { %p1289_p0 = por %p1288_p13, %p1287_p12 }
 0x33e   : > { %p1290_p1 = pnand %p1289_p0, %p1283_p9 }
 0x340   : > { %1293 = shalt.err (!%p1290_p1)
}
 0x341   : > { %1204 = dma.vmem_to_hbm [thread:$0]  (%p1450_p4), %s1597_s14, 128, %s1595_s16, %s878_s1  }
 0x342 PF: > { %p1210_p2 = scmp.ge.s32.totalorder %s1344_s22, 2  ;;  %s904_s26 = sand.u32 1, %s1324_s17  }
 0x343   : > { %s905_s24 = scalar_lea.sflag [#allocation5], %s904_s26 }
 0x344   : > { %p1207_p3 = pnand %p1210_p2, %p1457_p8 }
 0x346   : > { %1319 = dma.done.wait (!%p1207_p3), %s905_s24, 128  }
 0x347   : > { %1321 = vsyncadd (!%p1207_p3), %s905_s24, 4294967168  ;;  %s24_s22 = sadd.s32 1, %s1344_s22   ;;  %s1661_s17 = smov %s1328_s18 }
 0x348   : > { %p21_p5 = scmp.ge.s32.totalorder %s24_s22, 4   ;;  %s1662_s18 = smov %s1332_s19 }
 0x349   : > { %s1663_s19 = smov %s1463_s30  ;;  %s1664_s20 = smov %s1340_s21 }
 0x34a   : > { %s1665_s21 = smov %s1667_s25  ;;  %23 = sbr.rel (!%p21_p5) target bundleno = 7 (0x7), region = 128 }
 0x351   :  { %910 = vsyncpa [#allocation5], 1 }
 0x352   :  { %912 = vsyncpa [#allocation5 + $0x1], 1 }

</bundles_post_ra>
